<compile_context>
chip_gen: v7x
topology: tpu7x:2x2x1
jax: 0.10.0
libtpu: 0.0.40
codegen_flags: <defaults>
</compile_context>

<pallas_src>
import jax
import jax.numpy as jnp
from jax.experimental import pallas as pl
from jax.experimental.pallas import tpu as pltpu

IDENTITY_RANK = 20          # c.identity_rank
AGGREGATE_ITER_NUM = 5      # c.AGGREGATE_ITER_NUM
HIDDEN = 32                 # synthesized Deformer hidden width


# ---------------------------------------------------------------------------
# Fused Pallas kernel: Deformer MLP + cal_topolo, transposed (lane-dense) layout
# ---------------------------------------------------------------------------
def _dsource_kernel(xT_ref, id_ref, w1xT_ref, w1idT_ref, b1T_ref,
                    w2T_ref, b2T_ref, adjT_ref, tT_ref, loss_ref):
    # Grid-invariant identity contribution, computed once:
    #   id_term[h] = sum_r w1id[r, h] * identity[r]        -> (H, 1)
    id_term = jnp.sum(w1idT_ref[...] * id_ref[...], axis=-1, keepdims=True)

    # Deformer MLP in transposed layout (vertices on the lane axis).
    h = jnp.dot(w1xT_ref[...], xT_ref[...],
                preferred_element_type=jnp.float32)          # (H, N)
    h = jnp.maximum(h + id_term + b1T_ref[...], 0.0)
    t = jnp.dot(w2T_ref[...], h,
                preferred_element_type=jnp.float32) + b2T_ref[...]   # (12, N)
    tT_ref[...] = t

    # cal_topolo:  iter^T <- iter^T @ adj^T  (== (adj @ iter)^T), K iterations.
    it = t
    acc = jnp.float32(0.0)
    for _ in range(AGGREGATE_ITER_NUM):
        it = jnp.dot(it, adjT_ref[...], preferred_element_type=jnp.float32)
        acc = acc + jnp.sum((t - it) ** 2)
    # Single final normalization == sum_k mean((t - it_k)^2) / K
    scale = 1.0 / (t.shape[0] * t.shape[1] * AGGREGATE_ITER_NUM)
    loss_ref[0, 0] = acc * scale


# ---------------------------------------------------------------------------
# Wrapper (parameter re-layout is tiny one-time plumbing under jit)
# ---------------------------------------------------------------------------
@jax.jit
def dsource_forward(target_id, x, identifier_emb, adjacency_matrix, w1, b1, w2, b2):
    """Dsource.forward(id, x): identity lookup -> Deformer -> (trans_mat, loss)."""
    n = x.shape[0]

    identity = identifier_emb[target_id].reshape(1, -1).astype(jnp.float32)  # (1, rank)
    xT = x.T.astype(jnp.float32)                                             # (3, N)
    w1xT = w1[:3, :].T.astype(jnp.float32)                                   # (H, 3)
    w1idT = w1[3:, :].T.astype(jnp.float32)                                  # (H, rank)
    b1T = b1.reshape(-1, 1).astype(jnp.float32)                              # (H, 1)
    w2T = w2.T.astype(jnp.float32)                                           # (12, H)
    b2T = b2.reshape(-1, 1).astype(jnp.float32)                              # (12, 1)
    adjT = adjacency_matrix.T.astype(jnp.float32)                            # (N, N)

    tT, loss = pl.pallas_call(
        _dsource_kernel,
        out_shape=(
            jax.ShapeDtypeStruct((12, n), jnp.float32),   # trans_mat^T (lane-dense)
            jax.ShapeDtypeStruct((1, 1), jnp.float32),    # scalar loss
        ),
        grid=(1,),
        in_specs=[
            pl.BlockSpec(xT.shape, lambda i: (0, 0)),
            pl.BlockSpec(identity.shape, lambda i: (0, 0)),
            pl.BlockSpec(w1xT.shape, lambda i: (0, 0)),
            pl.BlockSpec(w1idT.shape, lambda i: (0, 0)),
            pl.BlockSpec(b1T.shape, lambda i: (0, 0)),
            pl.BlockSpec(w2T.shape, lambda i: (0, 0)),
            pl.BlockSpec(b2T.shape, lambda i: (0, 0)),
            pl.BlockSpec(adjT.shape, lambda i: (0, 0)),
        ],
        out_specs=(
            pl.BlockSpec((12, n), lambda i: (0, 0)),
            pl.BlockSpec(memory_space=pltpu.MemorySpace.SMEM),
        ),
        compiler_params=pltpu.CompilerParams(
            dimension_semantics=("arbitrary",)),
    )(xT, identity, w1xT, w1idT, b1T, w2T, b2T, adjT)

    trans_mat = tT.T.reshape(n, 3, 4)   # back to PyTorch (N, 3, 4) layout
    return trans_mat, loss[0, 0]


# ---------------------------------------------------------------------------
# Deterministic setup + run
# ---------------------------------------------------------------------------
if __name__ == "__main__":
    key = jax.random.PRNGKey(0)
    k1, k2, k3, k4 = jax.random.split(key, 4)

    N = 128          # number of mesh vertices
    NUM_TARGET = 8   # num_target for Identifier

    # mesh.vert_cords()
    verts = jax.random.uniform(k1, (N, 3), jnp.float32, minval=-1.0, maxval=1.0)

    # mesh.get_adjacency_matrix(): ring topology + self loops, row-normalized
    idx = jnp.arange(N)
    adj = jnp.zeros((N, N), jnp.float32)
    adj = adj.at[idx, (idx + 1) % N].set(1.0)
    adj = adj.at[idx, (idx - 1) % N].set(1.0)
    adj = adj.at[idx, idx].set(1.0)
    adj = adj / jnp.sum(adj, axis=1, keepdims=True)

    # Identifier parameters: embedding (num_target, identity_rank)
    identifier_emb = 0.1 * jax.random.normal(k2, (NUM_TARGET, IDENTITY_RANK), jnp.float32)

    # Deformer parameters: MLP (3+rank -> HIDDEN -> 12)
    feat = 3 + IDENTITY_RANK
    w1 = 0.1 * jax.random.normal(k3, (feat, HIDDEN), jnp.float32)
    b1 = jnp.zeros((1, HIDDEN), jnp.float32)
    w2 = 0.1 * jax.random.normal(k4, (HIDDEN, 12), jnp.float32)
    b2 = jnp.eye(3, 4, dtype=jnp.float32).reshape(1, 12)  # bias ~ identity transform [I | 0]

    trans_mat, loss = dsource_forward(0, verts, identifier_emb, adj, w1, b1, w2, b2)
    jax.block_until_ready((trans_mat, loss))

    assert trans_mat.shape == (N, 3, 4)
    assert loss.shape == ()
    print("KERNEL_OK")
</pallas_src>

<mosaic_0001>
module attributes {stable_mosaic.version = 11 : i64} {
  func.func @_dsource_kernel(%arg0: i32, %arg1: memref<3x128xf32, #tpu.memory_space<vmem>>, %arg2: memref<1x20xf32, #tpu.memory_space<vmem>>, %arg3: memref<32x3xf32, #tpu.memory_space<vmem>>, %arg4: memref<32x20xf32, #tpu.memory_space<vmem>>, %arg5: memref<32x1xf32, #tpu.memory_space<vmem>>, %arg6: memref<12x32xf32, #tpu.memory_space<vmem>>, %arg7: memref<12x1xf32, #tpu.memory_space<vmem>>, %arg8: memref<128x128xf32, #tpu.memory_space<vmem>>, %arg9: memref<12x128xf32, #tpu.memory_space<vmem>>, %arg10: memref<1x1xf32, #tpu.memory_space<smem>>) attributes {dimension_semantics = [#tpu.dimension_semantics<arbitrary>], iteration_bounds = array<i64: 1>, scalar_prefetch = 0 : i64, scratch_operands = 0 : i64, tpu.core_type = #tpu.core_type<tc>, window_params = [{pipeline_mode = #tpu.pipeline_mode<synchronous>, transform_indices = @transform_0, window_bounds = array<i64: 3, 128>}, {pipeline_mode = #tpu.pipeline_mode<synchronous>, transform_indices = @transform_1, window_bounds = array<i64: 1, 20>}, {pipeline_mode = #tpu.pipeline_mode<synchronous>, transform_indices = @transform_2, window_bounds = array<i64: 32, 3>}, {pipeline_mode = #tpu.pipeline_mode<synchronous>, transform_indices = @transform_3, window_bounds = array<i64: 32, 20>}, {pipeline_mode = #tpu.pipeline_mode<synchronous>, transform_indices = @transform_4, window_bounds = array<i64: 32, 1>}, {pipeline_mode = #tpu.pipeline_mode<synchronous>, transform_indices = @transform_5, window_bounds = array<i64: 12, 32>}, {pipeline_mode = #tpu.pipeline_mode<synchronous>, transform_indices = @transform_6, window_bounds = array<i64: 12, 1>}, {pipeline_mode = #tpu.pipeline_mode<synchronous>, transform_indices = @transform_7, window_bounds = array<i64: 128, 128>}, {pipeline_mode = #tpu.pipeline_mode<synchronous>, transform_indices = @transform_8, window_bounds = array<i64: 12, 128>}, {transform_indices = @transform_9, window_bounds = array<i64: 1, 1>}]} {
    %c0 = arith.constant 0 : index
    %c0_0 = arith.constant 0 : index
    %0 = vector.load %arg4[%c0, %c0_0] : memref<32x20xf32, #tpu.memory_space<vmem>>, vector<32x20xf32>
    %c0_1 = arith.constant 0 : index
    %c0_2 = arith.constant 0 : index
    %1 = vector.load %arg2[%c0_1, %c0_2] : memref<1x20xf32, #tpu.memory_space<vmem>>, vector<1x20xf32>
    %2 = vector.broadcast %1 : vector<1x20xf32> to vector<32x20xf32>
    %3 = arith.mulf %0, %2 : vector<32x20xf32>
    %cst = arith.constant dense<0.000000e+00> : vector<32xf32>
    %4 = vector.multi_reduction <add>, %3, %cst [1] : vector<32x20xf32> to vector<32xf32>
    %5 = vector.shape_cast %4 : vector<32xf32> to vector<32x1xf32>
    %c0_3 = arith.constant 0 : index
    %c0_4 = arith.constant 0 : index
    %6 = vector.load %arg3[%c0_3, %c0_4] : memref<32x3xf32, #tpu.memory_space<vmem>>, vector<32x3xf32>
    %c0_5 = arith.constant 0 : index
    %c0_6 = arith.constant 0 : index
    %7 = vector.load %arg1[%c0_5, %c0_6] : memref<3x128xf32, #tpu.memory_space<vmem>>, vector<3x128xf32>
    %cst_7 = arith.constant dense<0.000000e+00> : vector<32x128xf32>
    %8 = tpu.matmul %6, %7, %cst_7 {dimension_numbers = #tpu.dot_dimension_numbers<[1], [0], [0], [1], [0, 0, 1, 1], [], []>} : vector<32x3xf32>, vector<3x128xf32>, vector<32x128xf32> -> vector<32x128xf32>
    %9 = vector.broadcast %5 : vector<32x1xf32> to vector<32x128xf32>
    %10 = arith.addf %8, %9 : vector<32x128xf32>
    %c0_8 = arith.constant 0 : index
    %c0_9 = arith.constant 0 : index
    %11 = vector.load %arg5[%c0_8, %c0_9] : memref<32x1xf32, #tpu.memory_space<vmem>>, vector<32x1xf32>
    %12 = vector.broadcast %11 : vector<32x1xf32> to vector<32x128xf32>
    %13 = arith.addf %10, %12 : vector<32x128xf32>
    %cst_10 = arith.constant 0.000000e+00 : f32
    %14 = vector.broadcast %cst_10 : f32 to vector<32x128xf32>
    %15 = arith.maximumf %13, %14 : vector<32x128xf32>
    %c0_11 = arith.constant 0 : index
    %c0_12 = arith.constant 0 : index
    %16 = vector.load %arg6[%c0_11, %c0_12] : memref<12x32xf32, #tpu.memory_space<vmem>>, vector<12x32xf32>
    %cst_13 = arith.constant dense<0.000000e+00> : vector<12x128xf32>
    %17 = tpu.matmul %16, %15, %cst_13 {dimension_numbers = #tpu.dot_dimension_numbers<[1], [0], [0], [1], [0, 0, 1, 1], [], []>} : vector<12x32xf32>, vector<32x128xf32>, vector<12x128xf32> -> vector<12x128xf32>
    %c0_14 = arith.constant 0 : index
    %c0_15 = arith.constant 0 : index
    %18 = vector.load %arg7[%c0_14, %c0_15] : memref<12x1xf32, #tpu.memory_space<vmem>>, vector<12x1xf32>
    %19 = vector.broadcast %18 : vector<12x1xf32> to vector<12x128xf32>
    %20 = arith.addf %17, %19 : vector<12x128xf32>
    %c0_16 = arith.constant 0 : index
    %c0_17 = arith.constant 0 : index
    %21 = vector.load %arg9[%c0_16, %c0_17] : memref<12x128xf32, #tpu.memory_space<vmem>>, vector<12x128xf32>
    tpu.vector_store %arg9[%c0_16, %c0_17], %20 {strides = array<i32>} : memref<12x128xf32, #tpu.memory_space<vmem>>, vector<12x128xf32>,
    %c0_18 = arith.constant 0 : index
    %c0_19 = arith.constant 0 : index
    %22 = vector.load %arg8[%c0_18, %c0_19] : memref<128x128xf32, #tpu.memory_space<vmem>>, vector<128x128xf32>
    %cst_20 = arith.constant dense<0.000000e+00> : vector<12x128xf32>
    %23 = tpu.matmul %20, %22, %cst_20 {dimension_numbers = #tpu.dot_dimension_numbers<[1], [0], [0], [1], [0, 0, 1, 1], [], []>} : vector<12x128xf32>, vector<128x128xf32>, vector<12x128xf32> -> vector<12x128xf32>
    %24 = arith.subf %20, %23 : vector<12x128xf32>
    %25 = arith.mulf %24, %24 : vector<12x128xf32>
    %26 = vector.shape_cast %25 : vector<12x128xf32> to vector<1x12x128xf32>
    %cst_21 = arith.constant dense<0.000000e+00> : vector<1xf32>
    %27 = vector.multi_reduction <add>, %26, %cst_21 [1, 2] : vector<1x12x128xf32> to vector<1xf32>
    %28 = vector.shape_cast %27 : vector<1xf32> to vector<1x1x1xf32>
    %29 = vector.extract %28[0, 0, 0] : f32 from vector<1x1x1xf32>
    %cst_22 = arith.constant 0.000000e+00 : f32
    %30 = arith.addf %cst_22, %29 : f32
    %c0_23 = arith.constant 0 : index
    %c0_24 = arith.constant 0 : index
    %31 = vector.load %arg8[%c0_23, %c0_24] : memref<128x128xf32, #tpu.memory_space<vmem>>, vector<128x128xf32>
    %cst_25 = arith.constant dense<0.000000e+00> : vector<12x128xf32>
    %32 = tpu.matmul %23, %31, %cst_25 {dimension_numbers = #tpu.dot_dimension_numbers<[1], [0], [0], [1], [0, 0, 1, 1], [], []>} : vector<12x128xf32>, vector<128x128xf32>, vector<12x128xf32> -> vector<12x128xf32>
    %33 = arith.subf %20, %32 : vector<12x128xf32>
    %34 = arith.mulf %33, %33 : vector<12x128xf32>
    %35 = vector.shape_cast %34 : vector<12x128xf32> to vector<1x12x128xf32>
    %cst_26 = arith.constant dense<0.000000e+00> : vector<1xf32>
    %36 = vector.multi_reduction <add>, %35, %cst_26 [1, 2] : vector<1x12x128xf32> to vector<1xf32>
    %37 = vector.shape_cast %36 : vector<1xf32> to vector<1x1x1xf32>
    %38 = vector.extract %37[0, 0, 0] : f32 from vector<1x1x1xf32>
    %39 = arith.addf %30, %38 : f32
    %c0_27 = arith.constant 0 : index
    %c0_28 = arith.constant 0 : index
    %40 = vector.load %arg8[%c0_27, %c0_28] : memref<128x128xf32, #tpu.memory_space<vmem>>, vector<128x128xf32>
    %cst_29 = arith.constant dense<0.000000e+00> : vector<12x128xf32>
    %41 = tpu.matmul %32, %40, %cst_29 {dimension_numbers = #tpu.dot_dimension_numbers<[1], [0], [0], [1], [0, 0, 1, 1], [], []>} : vector<12x128xf32>, vector<128x128xf32>, vector<12x128xf32> -> vector<12x128xf32>
    %42 = arith.subf %20, %41 : vector<12x128xf32>
    %43 = arith.mulf %42, %42 : vector<12x128xf32>
    %44 = vector.shape_cast %43 : vector<12x128xf32> to vector<1x12x128xf32>
    %cst_30 = arith.constant dense<0.000000e+00> : vector<1xf32>
    %45 = vector.multi_reduction <add>, %44, %cst_30 [1, 2] : vector<1x12x128xf32> to vector<1xf32>
    %46 = vector.shape_cast %45 : vector<1xf32> to vector<1x1x1xf32>
    %47 = vector.extract %46[0, 0, 0] : f32 from vector<1x1x1xf32>
    %48 = arith.addf %39, %47 : f32
    %c0_31 = arith.constant 0 : index
    %c0_32 = arith.constant 0 : index
    %49 = vector.load %arg8[%c0_31, %c0_32] : memref<128x128xf32, #tpu.memory_space<vmem>>, vector<128x128xf32>
    %cst_33 = arith.constant dense<0.000000e+00> : vector<12x128xf32>
    %50 = tpu.matmul %41, %49, %cst_33 {dimension_numbers = #tpu.dot_dimension_numbers<[1], [0], [0], [1], [0, 0, 1, 1], [], []>} : vector<12x128xf32>, vector<128x128xf32>, vector<12x128xf32> -> vector<12x128xf32>
    %51 = arith.subf %20, %50 : vector<12x128xf32>
    %52 = arith.mulf %51, %51 : vector<12x128xf32>
    %53 = vector.shape_cast %52 : vector<12x128xf32> to vector<1x12x128xf32>
    %cst_34 = arith.constant dense<0.000000e+00> : vector<1xf32>
    %54 = vector.multi_reduction <add>, %53, %cst_34 [1, 2] : vector<1x12x128xf32> to vector<1xf32>
    %55 = vector.shape_cast %54 : vector<1xf32> to vector<1x1x1xf32>
    %56 = vector.extract %55[0, 0, 0] : f32 from vector<1x1x1xf32>
    %57 = arith.addf %48, %56 : f32
    %c0_35 = arith.constant 0 : index
    %c0_36 = arith.constant 0 : index
    %58 = vector.load %arg8[%c0_35, %c0_36] : memref<128x128xf32, #tpu.memory_space<vmem>>, vector<128x128xf32>
    %cst_37 = arith.constant dense<0.000000e+00> : vector<12x128xf32>
    %59 = tpu.matmul %50, %58, %cst_37 {dimension_numbers = #tpu.dot_dimension_numbers<[1], [0], [0], [1], [0, 0, 1, 1], [], []>} : vector<12x128xf32>, vector<128x128xf32>, vector<12x128xf32> -> vector<12x128xf32>
    %60 = arith.subf %20, %59 : vector<12x128xf32>
    %61 = arith.mulf %60, %60 : vector<12x128xf32>
    %62 = vector.shape_cast %61 : vector<12x128xf32> to vector<1x12x128xf32>
    %cst_38 = arith.constant dense<0.000000e+00> : vector<1xf32>
    %63 = vector.multi_reduction <add>, %62, %cst_38 [1, 2] : vector<1x12x128xf32> to vector<1xf32>
    %64 = vector.shape_cast %63 : vector<1xf32> to vector<1x1x1xf32>
    %65 = vector.extract %64[0, 0, 0] : f32 from vector<1x1x1xf32>
    %66 = arith.addf %57, %65 : f32
    %cst_39 = arith.constant 1.3020834E-4 : f32
    %67 = arith.mulf %66, %cst_39 : f32
    %c0_40 = arith.constant 0 : index
    %c0_41 = arith.constant 0 : index
    %68 = memref.load %arg10[%c0_40, %c0_41] : memref<1x1xf32, #tpu.memory_space<smem>>
    memref.store %67, %arg10[%c0_40, %c0_41] : memref<1x1xf32, #tpu.memory_space<smem>>
    return
  }
  func.func @transform_0(%arg0: i32) -> (i32, i32) {
    %c0_i32 = arith.constant 0 : i32
    %c0_i32_0 = arith.constant 0 : i32
    %c0_i32_1 = arith.constant 0 : i32
    return %c0_i32, %c0_i32_0 : i32, i32
  }
  func.func @transform_1(%arg0: i32) -> (i32, i32) {
    %c0_i32 = arith.constant 0 : i32
    %c0_i32_0 = arith.constant 0 : i32
    %c0_i32_1 = arith.constant 0 : i32
    return %c0_i32, %c0_i32_0 : i32, i32
  }
  func.func @transform_2(%arg0: i32) -> (i32, i32) {
    %c0_i32 = arith.constant 0 : i32
    %c0_i32_0 = arith.constant 0 : i32
    %c0_i32_1 = arith.constant 0 : i32
    return %c0_i32, %c0_i32_0 : i32, i32
  }
  func.func @transform_3(%arg0: i32) -> (i32, i32) {
    %c0_i32 = arith.constant 0 : i32
    %c0_i32_0 = arith.constant 0 : i32
    %c0_i32_1 = arith.constant 0 : i32
    return %c0_i32, %c0_i32_0 : i32, i32
  }
  func.func @transform_4(%arg0: i32) -> (i32, i32) {
    %c0_i32 = arith.constant 0 : i32
    %c0_i32_0 = arith.constant 0 : i32
    %c0_i32_1 = arith.constant 0 : i32
    return %c0_i32, %c0_i32_0 : i32, i32
  }
  func.func @transform_5(%arg0: i32) -> (i32, i32) {
    %c0_i32 = arith.constant 0 : i32
    %c0_i32_0 = arith.constant 0 : i32
    %c0_i32_1 = arith.constant 0 : i32
    return %c0_i32, %c0_i32_0 : i32, i32
  }
  func.func @transform_6(%arg0: i32) -> (i32, i32) {
    %c0_i32 = arith.constant 0 : i32
    %c0_i32_0 = arith.constant 0 : i32
    %c0_i32_1 = arith.constant 0 : i32
    return %c0_i32, %c0_i32_0 : i32, i32
  }
  func.func @transform_7(%arg0: i32) -> (i32, i32) {
    %c0_i32 = arith.constant 0 : i32
    %c0_i32_0 = arith.constant 0 : i32
    %c0_i32_1 = arith.constant 0 : i32
    return %c0_i32, %c0_i32_0 : i32, i32
  }
  func.func @transform_8(%arg0: i32) -> (i32, i32) {
    %c0_i32 = arith.constant 0 : i32
    %c0_i32_0 = arith.constant 0 : i32
    %c0_i32_1 = arith.constant 0 : i32
    return %c0_i32, %c0_i32_0 : i32, i32
  }
  func.func @transform_9(%arg0: i32) -> (i32, i32) {
    %c0_i32 = arith.constant 0 : i32
    %c0_i32_0 = arith.constant 0 : i32
    %c0_i32_1 = arith.constant 0 : i32
    return %c0_i32, %c0_i32_0 : i32, i32
  }
}

</mosaic_0001>

<bundles_post_ra>
// kernel: dsource_forward.1
= control target key start
LH: loop header
LB: loop body
LE: loop exit
PB: predicated region body
PF: predicated region fallthrough
CT: control target
= control target key end

     0   :  { %vm78_vm0 = vcmask 1042432   ;;  %vm65_vm1 = vcmask 23552   ;;  %vm47_vm2 = vcmask 162816   ;;  %v1286_v8 = vmov 0   ;;  %s1587_s0 = inlined_call_operand.vmem [shape: f32[3,128], index: 0, kind: input, shape index: {}]   ;;  %s1588_s1 = inlined_call_operand.vmem [shape: f32[1,20], index: 1, kind: input, shape index: {}]   ;;  %s1589_s2 = inlined_call_operand.vmem [shape: f32[32,3], index: 2, kind: input, shape index: {}]   ;;  %s1590_s3 = inlined_call_operand.vmem [shape: f32[32,20], index: 3, kind: input, shape index: {}]   ;;  %s1591_s4 = inlined_call_operand.vmem [shape: f32[32,1], index: 4, kind: input, shape index: {}]   ;;  %s1592_s5 = inlined_call_operand.vmem [shape: f32[12,32], index: 5, kind: input, shape index: {}]   ;;  %s1593_s6 = inlined_call_operand.vmem [shape: f32[12,1], index: 6, kind: input, shape index: {}]   ;;  %s1594_s7 = inlined_call_operand.vmem [shape: f32[128,128], index: 7, kind: input, shape index: {}]   ;;  %s1595_s8 = inlined_call_operand.vmem [shape: f32[12,128], index: 8, kind: output, shape index: {0}]   ;;  %s1596_s9 = inlined_call_operand.hbm [shape: f32[1,1], index: 9, kind: output, shape index: {1}]  }
   0x1   :  { %v64_v0 = vld [vmem:[%s1587_s0] sm:$0x7]  ;;  %v61_v2 = vld [vmem:[%s1589_s2 + $0x8] sm:$0xff]  ;;  %v62_v3 = vld [vmem:[%s1589_s2 + $0x10] sm:$0xff]  ;;  %1273 = vset.pattern.permute.xlu1 %v1286_v8  ;;  %1272 = vset.pattern.permute.xlu0 %v1286_v8 }
   0x2   :  { %v60_v1 = vld [vmem:[%s1589_s2] sm:$0xff]  ;;  %898 = vmatprep.subr.msk.mxu1 %vm78_vm0, %v64_v0  ;;  %v34_v4 = vld [vmem:[%s1590_s3 + $0x10] sm:$0xff]  ;;  %v35_v6 = vld [vmem:[%s1590_s3 + $0x18] sm:$0xff] }
   0x3   :  { %900 = vmatprep.mubr.msk.f32.mxu1 %vm65_vm1, %v60_v1  ;;  %899 = vmatpush3.msk.msra.mxu1 %vm78_vm0, %v64_v0  ;;  %v789_v5 = vld [vmem:[%s1588_s1] ss:$0 sm:$0xff]  ;;  %v33_v12 = vld [vmem:[%s1590_s3 + $0x8] sm:$0xff]  ;;  %v63_v13 = vld [vmem:[%s1589_s2 + $0x18] sm:$0xff] }
   0x4   :  { %v32_v7 = vld [vmem:[%s1590_s3] sm:$0xff]  ;;  %901 = vmatmul.mubr.msk.f32.vlgmr.msra.gmra.mrb[0].mxu1 %vm65_vm1, %v61_v2  ;;  %v45_v9 = vmul.f32 %v789_v5, %v34_v4  ;;  %v46_v10 = vmul.f32 %v789_v5, %v35_v6  ;;  %v44_v14 = vmul.f32 %v789_v5, %v33_v12 }
   0x5   :  { %v43_v11 = vmul.f32 %v789_v5, %v32_v7  ;;  %903 = vmatprep.mubr.msk.f32.mxu1 %vm65_vm1, %v62_v3 }
   0x6   :  { %v54_v15 = vsel %vm47_vm2, %v45_v9, 0.0 }
   0x7   :  { %v48_v16 = vsel %vm47_vm2, %v43_v11, 0.0 }
   0x8   :  { %15 = vsyncpa [#allocation3], 0  ;;  %55 = vadd.xlane.f32.xlu1 %v54_v15  ;;  %49 = vadd.xlane.f32.xlu0 %v48_v16  ;;  %v57_v17 = vsel %vm47_vm2, %v46_v10, 0.0  ;;  %v51_v18 = vsel %vm47_vm2, %v44_v14, 0.0  ;;  %v168_v19 = vld [vmem:[%s1591_s4 + $0x8] sm:$0xff]  ;;  %v169_v20 = vld [vmem:[%s1591_s4 + $0x10] sm:$0xff] }
   0x9   :  { %904 = vmatmul.mubr.msk.f32.gmra.mrb[2].mxu1 %vm65_vm1, %v63_v13  ;;  %v167_v21 = vld [vmem:[%s1591_s4] sm:$0xff]  ;;  %v170_v22 = vld [vmem:[%s1591_s4 + $0x18] sm:$0xff]  ;;  %v202_v24 = vld [vmem:[%s1593_s6 + $0x8] sm:$0xf]  ;;  %vm213_vm3 = vcmask 261120   ;;  %vm392_vm4 = vcmask 1043456  }
   0xa   :  { %v201_v23 = vld [vmem:[%s1593_s6] sm:$0xff]  ;;  %v298_v27 = vld [vmem:[%s1594_s7 + $0x8] sm:$0xff]  ;;  %v299_v28 = vld [vmem:[%s1594_s7 + $0x10] sm:$0xff]  ;;  %s1274_s11 = scalar_lea.hbm %s1596_s9, 16 }
   0xb   :  { %v199_v25 = vld [vmem:[%s1592_s5] sm:$0xff]  ;;  %v300_v30 = vld [vmem:[%s1594_s7 + $0x18] sm:$0xff]  ;;  %v302_v33 = vld [vmem:[%s1594_s7 + $0x28] sm:$0xff]  ;;  %p1275_p0 = scmp.ne.s32.totalorder %s1596_s9, %s1274_s11  ;;  %p1278_p1 = scmp.lt.u32.totalorder %s1274_s11, %s1596_s9 }
   0xc   :  { %58 = vadd.xlane.f32.xlu1 %v57_v17  ;;  %52 = vadd.xlane.f32.xlu0 %v51_v18  ;;  %v297_v26 = vld [vmem:[%s1594_s7] sm:$0xff]  ;;  %v1412_v31 = vpack.c.bf16 %v300_v30, %v299_v28  ;;  %v303_v35 = vld [vmem:[%s1594_s7 + $0x30] sm:$0xff]  ;;  %v304_v36 = vld [vmem:[%s1594_s7 + $0x38] sm:$0xff] }
   0xd   :  { %914 = vmatprep.mubr.msk.f32.mxu1 %vm213_vm3, %v199_v25  ;;  %v1407_v29 = vpack.c.bf16 %v298_v27, %v297_v26  ;;  %v301_v32 = vld [vmem:[%s1594_s7 + $0x20] sm:$0xff]  ;;  %v1433_v37 = vpack.c.bf16 %v304_v36, %v303_v35  ;;  %v306_v39 = vld [vmem:[%s1594_s7 + $0x48] sm:$0xff]  ;;  %v307_v41 = vld [vmem:[%s1594_s7 + $0x50] sm:$0xff]  ;;  %p1280_p2 = pnand %p1278_p1, %p1275_p0 }
   0xe   :  { %v1423_v34 = vpack.c.bf16 %v302_v33, %v301_v32  ;;  %v305_v38 = vld [vmem:[%s1594_s7 + $0x40] sm:$0xff]  ;;  %v308_v42 = vld [vmem:[%s1594_s7 + $0x58] sm:$0xff]  ;;  %v310_v45 = vld [vmem:[%s1594_s7 + $0x68] sm:$0xff] }
   0xf   :  { %1101 = vmatprep.subr.bf16.mxu0 %v1407_v29  ;;  %v1443_v40 = vpack.c.bf16 %v306_v39, %v305_v38  ;;  %v1453_v43 = vpack.c.bf16 %v308_v42, %v307_v41  ;;  %v309_v44 = vld [vmem:[%s1594_s7 + $0x60] sm:$0xff]  ;;  %v200_v9 = vld [vmem:[%s1592_s5 + $0x8] sm:$0xf]  ;;  %v311_v10 = vld [vmem:[%s1594_s7 + $0x70] sm:$0xff] }
  0x10   :  { %1103 = vmatpush3.bf16.msra.mxu0 %v1407_v29  ;;  %v1463_v46 = vpack.c.bf16 %v310_v45, %v309_v44  ;;  %v312_v11 = vld [vmem:[%s1594_s7 + $0x78] sm:$0xff] }
  0x11   :  { %1105 = vmatprep.subr.bf16.mxu0 %v1412_v31  ;;  %v1492_v12 = vpack.c.bf16 %v312_v11, %v311_v10 }
  0x14   :  { %1107 = vmatpush3.bf16.msra.mxu0 %v1412_v31 }
  0x15   :  { %1109 = vmatprep.subr.bf16.mxu0 %v1423_v34 }
  0x18   :  { %1111 = vmatpush3.bf16.msra.mxu0 %v1423_v34 }
  0x19   :  { %1113 = vmatprep.subr.bf16.mxu0 %v1433_v37 }
  0x1c   :  { %1115 = vmatpush3.bf16.msra.mxu0 %v1433_v37 }
  0x1d   :  { %178 = vperm.xlu1 %1273, %v168_v19   ;;  %1117 = vmatprep.subr.bf16.mxu0 %v1443_v40 }
  0x20   :  { %1119 = vmatpush3.bf16.msra.mxu0 %v1443_v40 }
  0x21   :  { %183 = vperm.xlu1 %1273, %v169_v20   ;;  %1121 = vmatprep.subr.bf16.mxu0 %v1453_v43 }
  0x22   :  { %173 = vperm.xlu0 %1272, %v167_v21  }
  0x24   :  { %1123 = vmatpush3.bf16.msra.mxu0 %v1453_v43 }
  0x25   :  { %188 = vperm.xlu1 %1273, %v170_v22   ;;  %1125 = vmatprep.subr.bf16.mxu0 %v1463_v46 }
  0x28   :  { %1127 = vmatpush3.bf16.msra.mxu0 %v1463_v46 }
  0x29   :  { %205 = vperm.xlu1 %1273, %v201_v23   ;;  %1129 = vmatprep.subr.bf16.mxu0 %v1492_v12 }
  0x2c   :  { %1131 = vmatpush3.bf16.msra.mxu0 %v1492_v12 }
  0x2d   :  { %210 = vperm.xlu1 %1273, %v202_v24   ;;  %1165 = vmatprep.subr.bf16.mxu0 %v1407_v29 }
  0x95   :  { %v56_v47 = vpop.xlane.xlu1 %55  ;;  %v50_v49 = vpop.xlane.xlu0 %49 }
  0x99   :  { %v59_v48 = vpop.xlane.xlu1 %58  ;;  %v53_v51 = vpop.xlane.xlu0 %52 }
  0x9d   :  { %v179_v50 = vpop.permute.xlu1 %178 }
  0xa1   :  { %v184_v52 = vpop.permute.xlu1 %183  ;;  %v174_v56 = vpop.permute.xlu0 %173 }
  0xa5   :  { %v189_v0 = vpop.permute.xlu1 %188 }
  0xa9   :  { %v206_v13 = vpop.permute.xlu1 %205 }
  0xad   :  { %v211_v14 = vpop.permute.xlu1 %210 }
  0xd7   :  { %v902_v53 = vpop.f32.mrb[0].mxu1 }
  0xd8   :  { %v154_v54 = vadd.f32 %v902_v53, %v53_v51  ;;  %v148_v55 = vpop.f32.mrb[1].mxu1 }
  0xd9   :  { %v149_v57 = vadd.f32 %v148_v55, %v50_v49 }
  0xda   :  { %v192_v58 = vadd.f32 %v179_v50, %v154_v54 }
  0xdb   :  { %v191_v59 = vadd.f32 %v174_v56, %v149_v57 }
  0xdc   :  { %v905_v60 = vpop.f32.mrb[2].mxu1  ;;  %v196_v61 = vmax.f32 %v192_v58, 0.0 }
  0xdd   :  { %v164_v62 = vadd.f32 %v905_v60, %v59_v48  ;;  %v158_v63 = vpop.f32.mrb[3].mxu1  ;;  %v195_v1 = vmax.f32 %v191_v59, 0.0 }
  0xde   :  { %v159_v2 = vadd.f32 %v158_v63, %v56_v47 }
  0xdf   :  { %v194_v3 = vadd.f32 %v189_v0, %v164_v62  ;;  %v1092_v4 = vpack.c.bf16 %v196_v61, %v195_v1 }
  0xe0   :  { %v193_v5 = vadd.f32 %v184_v52, %v159_v2 }
  0xe1   :  { %v198_v6 = vmax.f32 %v194_v3, 0.0  ;;  %1093 = vmatprep.subr.bf16.mxu1 %v1092_v4 }
  0xe2   :  { %v197_v7 = vmax.f32 %v193_v5, 0.0  ;;  %1095 = vmatpush3.bf16.msra.mxu1 %v1092_v4 }
  0xe4   :  { %v1096_v8 = vpack.c.bf16 %v198_v6, %v197_v7 }
  0xe6   :  { %1097 = vmatprep.subr.bf16.mxu1 %v1096_v8 }
  0xe7   :  { %1099 = vmatpush3.bf16.msra.mxu1 %v1096_v8 }
  0xe8   :  { %1133 = vmatprep.subr.bf16.mxu1 %v1407_v29 }
  0xea   :  { %915 = vmatmul.mubr.msk.f32.vlgmr.msra.gmra.mrb[4].mxu1 %vm213_vm3, %v200_v9 }
  0xeb   :  { %1135 = vmatpush3.bf16.msra.mxu1 %v1407_v29 }
  0xec   :  { %1137 = vmatprep.subr.bf16.mxu1 %v1412_v31 }
  0xef   :  { %1139 = vmatpush3.bf16.msra.mxu1 %v1412_v31 }
  0xf0   :  { %1141 = vmatprep.subr.bf16.mxu1 %v1423_v34 }
  0xf3   :  { %1143 = vmatpush3.bf16.msra.mxu1 %v1423_v34 }
  0xf4   :  { %1145 = vmatprep.subr.bf16.mxu1 %v1433_v37 }
  0xf7   :  { %1147 = vmatpush3.bf16.msra.mxu1 %v1433_v37 }
  0xf8   :  { %1149 = vmatprep.subr.bf16.mxu1 %v1443_v40 }
  0xfb   :  { %1151 = vmatpush3.bf16.msra.mxu1 %v1443_v40 }
  0xfc   :  { %1153 = vmatprep.subr.bf16.mxu1 %v1453_v43 }
  0xff   :  { %1155 = vmatpush3.bf16.msra.mxu1 %v1453_v43 }
 0x100   :  { %1157 = vmatprep.subr.bf16.mxu1 %v1463_v46 }
 0x103   :  { %1159 = vmatpush3.bf16.msra.mxu1 %v1463_v46 }
 0x104   :  { %1161 = vmatprep.subr.bf16.mxu1 %v1492_v12 }
 0x107   :  { %1163 = vmatpush3.bf16.msra.mxu1 %v1492_v12 }
 0x108   :  { %1197 = vmatprep.subr.bf16.mxu1 %v1407_v29 }
 0x1bd   :  { %v916_v15 = vpop.f32.mrb[4].mxu1 }
 0x1be   :  { %v1500_v16 = vadd.f32 %v916_v15, %v211_v14  ;;  %v286_v17 = vpop.f32.mrb[5].mxu1 }
 0x1bf   :  { %v1502_v18 = vadd.f32 %v286_v17, %v206_v13 }
 0x1c0   :  { %296 = vst [vmem:[%s1595_s8 + $0x8] sm:$0xf] %v1500_v16 }
 0x1c1   :  { %295 = vst [vmem:[%s1595_s8] sm:$0xff] %v1502_v18  ;;  %949 = vmatprep.mubr.f32.mxu0 %v1502_v18 }
 0x1c2   :  { %950 = vmatmul.mubr.f32.vlgmr.msra.gmra.mrb[0].mxu0 %v1500_v16 }
 0x1c3   :  { %1167 = vmatpush3.bf16.msra.mxu0 %v1407_v29 }
 0x1c4   :  { %1169 = vmatprep.subr.bf16.mxu0 %v1412_v31 }
 0x1c7   :  { %1171 = vmatpush3.bf16.msra.mxu0 %v1412_v31 }
 0x1c8   :  { %1173 = vmatprep.subr.bf16.mxu0 %v1423_v34 }
 0x1cb   :  { %1175 = vmatpush3.bf16.msra.mxu0 %v1423_v34 }
 0x1cc   :  { %1177 = vmatprep.subr.bf16.mxu0 %v1433_v37 }
 0x1cf   :  { %1179 = vmatpush3.bf16.msra.mxu0 %v1433_v37 }
 0x1d0   :  { %1181 = vmatprep.subr.bf16.mxu0 %v1443_v40 }
 0x1d3   :  { %1183 = vmatpush3.bf16.msra.mxu0 %v1443_v40 }
 0x1d4   :  { %1185 = vmatprep.subr.bf16.mxu0 %v1453_v43 }
 0x1d7   :  { %1187 = vmatpush3.bf16.msra.mxu0 %v1453_v43 }
 0x1d8   :  { %1189 = vmatprep.subr.bf16.mxu0 %v1463_v46 }
 0x1db   :  { %1191 = vmatpush3.bf16.msra.mxu0 %v1463_v46 }
 0x1dc   :  { %1193 = vmatprep.subr.bf16.mxu0 %v1492_v12 }
 0x1df   :  { %1195 = vmatpush3.bf16.msra.mxu0 %v1492_v12 }
 0x1e0   :  { %1229 = vmatprep.subr.bf16.mxu0 %v1407_v29 }
 0x295   :  { %v951_v19 = vpop.f32.mrb[0].mxu0 }
 0x296   :  { %v389_v20 = vsub.f32 %v1500_v16, %v951_v19  ;;  %v379_v21 = vpop.f32.mrb[1].mxu0 }
 0x297   :  { %v388_v22 = vsub.f32 %v1502_v18, %v379_v21  ;;  %984 = vmatprep.mubr.f32.mxu1 %v379_v21 }
 0x298   :  { %v391_v23 = vmul.f32 %v389_v20, %v389_v20  ;;  %985 = vmatmul.mubr.f32.vlgmr.msra.gmra.mrb[6].mxu1 %v951_v19 }
 0x299   :  { %v390_v24 = vmul.f32 %v388_v22, %v388_v22  ;;  %1199 = vmatpush3.bf16.msra.mxu1 %v1407_v29 }
 0x29a   :  { %v393_v25 = vsel %vm392_vm4, %v391_v23, 0.0  ;;  %1201 = vmatprep.subr.bf16.mxu1 %v1412_v31 }
 0x29b   :  { %v394_v26 = vadd.f32 %v393_v25, %v390_v24 }
 0x29d   :  { %395 = vadd.xlane.f32.xlu1 %v394_v26  ;;  %1203 = vmatpush3.bf16.msra.mxu1 %v1412_v31 }
 0x29e   :  { %1205 = vmatprep.subr.bf16.mxu1 %v1423_v34 }
 0x2a1   :  { %1207 = vmatpush3.bf16.msra.mxu1 %v1423_v34 }
 0x2a2   :  { %1209 = vmatprep.subr.bf16.mxu1 %v1433_v37 }
 0x2a5   :  { %1211 = vmatpush3.bf16.msra.mxu1 %v1433_v37 }
 0x2a6   :  { %1213 = vmatprep.subr.bf16.mxu1 %v1443_v40 }
 0x2a9   :  { %1215 = vmatpush3.bf16.msra.mxu1 %v1443_v40 }
 0x2aa   :  { %1217 = vmatprep.subr.bf16.mxu1 %v1453_v43 }
 0x2ad   :  { %1219 = vmatpush3.bf16.msra.mxu1 %v1453_v43 }
 0x2ae   :  { %1221 = vmatprep.subr.bf16.mxu1 %v1463_v46 }
 0x2b1   :  { %1223 = vmatpush3.bf16.msra.mxu1 %v1463_v46 }
 0x2b2   :  { %1225 = vmatprep.subr.bf16.mxu1 %v1492_v12 }
 0x2b5   :  { %1227 = vmatpush3.bf16.msra.mxu1 %v1492_v12 }
 0x32a   :  { %v396_v27 = vpop.xlane.xlu1 %395 }
 0x32b   :  { %v397_v28 = vrot.slane %v396_v27, 4 }
 0x32d   :  { %v398_v30 = vadd.f32 %v397_v28, %v396_v27 }
 0x32f   :  { %v399_v32 = vrot.slane %v398_v30, 2 }
 0x331   :  { %v400_v33 = vadd.f32 %v399_v32, %v398_v30 }
 0x333   :  { %v401_v35 = vrot.slane %v400_v33, 1 }
 0x335   :  { %v402_v36 = vadd.f32 %v401_v35, %v400_v33 }
 0x337   :  { %1260 = vpush %v402_v36 }
 0x368   :  { %s1261_s8 = spop %1260 }
 0x36b   :  { %v986_v38 = vpop.f32.mrb[6].mxu1 }
 0x36c   :  { %v481_v39 = vsub.f32 %v1500_v16, %v986_v38  ;;  %v471_v41 = vpop.f32.mrb[7].mxu1 }
 0x36d   :  { %v480_v42 = vsub.f32 %v1502_v18, %v471_v41  ;;  %1019 = vmatprep.mubr.f32.mxu0 %v471_v41 }
 0x36e   :  { %v483_v44 = vmul.f32 %v481_v39, %v481_v39  ;;  %1020 = vmatmul.mubr.f32.vlgmr.msra.gmra.mrb[2].mxu0 %v986_v38 }
 0x36f   :  { %v482_v45 = vmul.f32 %v480_v42, %v480_v42  ;;  %1231 = vmatpush3.bf16.msra.mxu0 %v1407_v29 }
 0x370   :  { %v484_v47 = vsel %vm392_vm4, %v483_v44, 0.0  ;;  %1233 = vmatprep.subr.bf16.mxu0 %v1412_v31 }
 0x371   :  { %v485_v48 = vadd.f32 %v484_v47, %v482_v45 }
 0x373   :  { %486 = vadd.xlane.f32.xlu0 %v485_v48  ;;  %1235 = vmatpush3.bf16.msra.mxu0 %v1412_v31 }
 0x374   :  { %1237 = vmatprep.subr.bf16.mxu0 %v1423_v34 }
 0x377   :  { %1239 = vmatpush3.bf16.msra.mxu0 %v1423_v34 }
 0x378   :  { %1241 = vmatprep.subr.bf16.mxu0 %v1433_v37 }
 0x37b   :  { %1243 = vmatpush3.bf16.msra.mxu0 %v1433_v37 }
 0x37c   :  { %1245 = vmatprep.subr.bf16.mxu0 %v1443_v40 }
 0x37f   :  { %1247 = vmatpush3.bf16.msra.mxu0 %v1443_v40 }
 0x380   :  { %1249 = vmatprep.subr.bf16.mxu0 %v1453_v43 }
 0x383   :  { %1251 = vmatpush3.bf16.msra.mxu0 %v1453_v43 }
 0x384   :  { %1253 = vmatprep.subr.bf16.mxu0 %v1463_v46 }
 0x387   :  { %1255 = vmatpush3.bf16.msra.mxu0 %v1463_v46 }
 0x388   :  { %1257 = vmatprep.subr.bf16.mxu0 %v1492_v12 }
 0x38b   :  { %1259 = vmatpush3.bf16.msra.mxu0 %v1492_v12 }
 0x400   :  { %v487_v29 = vpop.xlane.xlu0 %486 }
 0x401   :  { %v488_v31 = vrot.slane %v487_v29, 4 }
 0x403   :  { %v489_v34 = vadd.f32 %v488_v31, %v487_v29 }
 0x405   :  { %v490_v37 = vrot.slane %v489_v34, 2 }
 0x407   :  { %v491_v49 = vadd.f32 %v490_v37, %v489_v34 }
 0x409   :  { %v492_v50 = vrot.slane %v491_v49, 1 }
 0x40b   :  { %v493_v51 = vadd.f32 %v492_v50, %v491_v49 }
 0x40d   :  { %1262 = vpush %v493_v51 }
 0x43e   :  { %s1263_s24 = spop %1262 }
 0x43f   :  { %s495_s1 = sadd.f32 %s1263_s24, %s1261_s8 }
 0x441   :  { %v1021_v40 = vpop.f32.mrb[2].mxu0 }
 0x442   :  { %v572_v52 = vsub.f32 %v1500_v16, %v1021_v40  ;;  %v562_v43 = vpop.f32.mrb[3].mxu0 }
 0x443   :  { %v571_v53 = vsub.f32 %v1502_v18, %v562_v43  ;;  %1054 = vmatprep.mubr.f32.mxu1 %v562_v43 }
 0x444   :  { %v574_v46 = vmul.f32 %v572_v52, %v572_v52  ;;  %1055 = vmatmul.mubr.f32.vlgmr.msra.gmra.mrb[8].mxu1 %v1021_v40 }
 0x445   :  { %v573_v54 = vmul.f32 %v571_v53, %v571_v53 }
 0x446   :  { %v575_v55 = vsel %vm392_vm4, %v574_v46, 0.0 }
 0x447   :  { %v576_v56 = vadd.f32 %v575_v55, %v573_v54 }
 0x449   :  { %577 = vadd.xlane.f32.xlu1 %v576_v56 }
 0x4d6   :  { %v578_v57 = vpop.xlane.xlu1 %577 }
 0x4d7   :  { %v579_v58 = vrot.slane %v578_v57, 4 }
 0x4d9   :  { %v580_v59 = vadd.f32 %v579_v58, %v578_v57 }
 0x4db   :  { %v581_v60 = vrot.slane %v580_v59, 2 }
 0x4dd   :  { %v582_v61 = vadd.f32 %v581_v60, %v580_v59 }
 0x4df   :  { %v583_v62 = vrot.slane %v582_v61, 1 }
 0x4e1   :  { %v584_v63 = vadd.f32 %v583_v62, %v582_v61 }
 0x4e3   :  { %1264 = vpush %v584_v63 }
 0x514   :  { %s1265_s25 = spop %1264 }
 0x515   :  { %s586_s3 = sadd.f32 %s1265_s25, %s495_s1 }
 0x517   :  { %v1056_v0 = vpop.f32.mrb[8].mxu1 }
 0x518   :  { %v663_v1 = vsub.f32 %v1500_v16, %v1056_v0  ;;  %v653_v2 = vpop.f32.mrb[9].mxu1 }
 0x519   :  { %v662_v3 = vsub.f32 %v1502_v18, %v653_v2  ;;  %1089 = vmatprep.mubr.f32.mxu0 %v653_v2 }
 0x51a   :  { %v665_v4 = vmul.f32 %v663_v1, %v663_v1  ;;  %1090 = vmatmul.mubr.f32.vlgmr.msra.gmra.mrb[4].mxu0 %v1056_v0 }
 0x51b   :  { %v664_v5 = vmul.f32 %v662_v3, %v662_v3 }
 0x51c   :  { %v666_v6 = vsel %vm392_vm4, %v665_v4, 0.0 }
 0x51d   :  { %v667_v7 = vadd.f32 %v666_v6, %v664_v5 }
 0x51f   :  { %668 = vadd.xlane.f32.xlu1 %v667_v7 }
 0x5ac   :  { %v669_v8 = vpop.xlane.xlu1 %668 }
 0x5ad   :  { %v670_v9 = vrot.slane %v669_v8, 4 }
 0x5af   :  { %v671_v10 = vadd.f32 %v670_v9, %v669_v8 }
 0x5b1   :  { %v672_v11 = vrot.slane %v671_v10, 2 }
 0x5b3   :  { %v673_v12 = vadd.f32 %v672_v11, %v671_v10 }
 0x5b5   :  { %v674_v13 = vrot.slane %v673_v12, 1 }
 0x5b7   :  { %v675_v14 = vadd.f32 %v674_v13, %v673_v12 }
 0x5b9   :  { %1266 = vpush %v675_v14 }
 0x5ea   :  { %s1267_s26 = spop %1266 }
 0x5eb   :  { %s677_s27 = sadd.f32 %s1267_s26, %s586_s3 }
 0x5ed   :  { %v1091_v15 = vpop.f32.mrb[4].mxu0 }
 0x5ee   :  { %v754_v17 = vsub.f32 %v1500_v16, %v1091_v15  ;;  %v744_v19 = vpop.f32.mrb[5].mxu0 }
 0x5ef   :  { %v753_v20 = vsub.f32 %v1502_v18, %v744_v19 }
 0x5f0   :  { %v756_v21 = vmul.f32 %v754_v17, %v754_v17 }
 0x5f1   :  { %v755_v22 = vmul.f32 %v753_v20, %v753_v20 }
 0x5f2   :  { %v757_v23 = vsel %vm392_vm4, %v756_v21, 0.0 }
 0x5f3   :  { %v758_v24 = vadd.f32 %v757_v23, %v755_v22 }
 0x5f5   :  { %759 = vadd.xlane.f32.xlu0 %v758_v24 }
 0x682   :  { %v760_v25 = vpop.xlane.xlu0 %759 }
 0x683   :  { %v761_v26 = vrot.slane %v760_v25, 4 }
 0x685   :  { %v762_v27 = vadd.f32 %v761_v26, %v760_v25 }
 0x687   :  { %v763_v28 = vrot.slane %v762_v27, 2 }
 0x689   :  { %v764_v30 = vadd.f32 %v763_v28, %v762_v27 }
 0x68b   :  { %v765_v32 = vrot.slane %v764_v30, 1 }
 0x68d   :  { %v766_v33 = vadd.f32 %v765_v32, %v764_v30 }
 0x68f   :  { %1268 = vpush %v766_v33 }
 0x6c0   :  { %s1269_s2 = spop %1268 }
 0x6c1   :  { %s768_s28 = sadd.f32 %s1269_s2, %s677_s27 }
 0x6c3   :  { %s769_s29 = smul.f32 0.00013020834, %s768_s28 }
 0x6c5   :  { %771 = sst [smem:[#allocation2]] %s769_s29 }
 0x6c6   :  { %1283 = shalt.err (!%p1280_p2)
}
 0x6c7   :  { %s1287_s16 = smov [#allocation2]  }
 0x6c8   :  { %781 = dma.smem_to_hbm %s1287_s16, 16, %s1596_s9, [#allocation3]  }
 0x6c9   :  { %1284 = dma.done.wait [#allocation3], 16  }
 0x6ca   :  { %1285 = vsyncadd [#allocation3], 4294967280 }
 0x6cb   :  { %787 = sfence }
 0x6cc   :  { %788 = vsyncpa [#allocation3], 1 }

</bundles_post_ra>
